<compile_context>
chip_gen: v5e
topology: v5e:2x2
jax: 0.10.0
libtpu: 0.0.40
codegen_flags: <defaults>
</compile_context>

<pallas_src>
import jax
import jax.numpy as jnp
from jax import lax
from jax.experimental import pallas as pl
from jax.experimental.pallas import tpu as pltpu


def _embed_gather_kernel(labels_ref, table_ref, out_ref):
    # labels_ref: SMEM (B_pad,) int32 (scalar prefetch).
    # table_ref:  VMEM (V, H) -- full embedding table, resident across grid steps.
    # out_ref:    VMEM (TB, H) -- output tile for this block of labels.
    tb = out_ref.shape[0]
    base = pl.program_id(0) * tb

    def body(r, carry):
        lbl = labels_ref[base + r]          # scalar read from SMEM
        out_ref[r, :] = table_ref[lbl, :]   # VMEM-side dynamic row gather
        return carry

    # Fully unroll small tiles so the LLO scheduler can interleave the loads.
    lax.fori_loop(0, tb, body, 0, unroll=(tb <= 32))


def pallas_label_embed(labels, table):
    """Gather `table[labels]` and unsqueeze dim 1 -> (B, 1, H)."""
    B = labels.shape[0]
    V, H = table.shape
    labels = labels.astype(jnp.int32)

    # Tile of labels handled per grid step: sublane-full output blocks.
    TB = 128 if B >= 128 else 8
    B_pad = pl.cdiv(B, TB) * TB
    if B_pad != B:
        # Padded slots gather row 0 (always in-range); sliced off below.
        labels = jnp.pad(labels, (0, B_pad - B))

    out = pl.pallas_call(
        _embed_gather_kernel,
        out_shape=jax.ShapeDtypeStruct((B_pad, H), table.dtype),
        grid_spec=pltpu.PrefetchScalarGridSpec(
            num_scalar_prefetch=1,
            grid=(B_pad // TB,),
            in_specs=[
                # Whole table as one block with a constant index: DMA'd to VMEM
                # once and reused for every grid step.
                pl.BlockSpec((V, H), lambda i, lbl: (0, 0)),
            ],
            out_specs=pl.BlockSpec((TB, H), lambda i, lbl: (i, 0)),
        ),
        compiler_params=pltpu.CompilerParams(
            dimension_semantics=("parallel",),
        ),
    )(labels, table)

    # unsqueeze(1) + drop padding; pure layout, fused by XLA.
    return out[:B, None, :]


class LabelEmbedder:
    """JAX/Pallas port of the PyTorch LabelEmbedder."""

    def __init__(self, num_classes, hidden_size, dropout_prob, *, key):
        use_cfg_embedding = int(dropout_prob > 0)
        # nn.Embedding default init: N(0, 1)
        self.embedding_table = jax.random.normal(
            key, (num_classes + use_cfg_embedding, hidden_size), dtype=jnp.float32
        )
        self.num_classes = num_classes
        self.dropout_prob = dropout_prob

    def token_drop(self, labels, force_drop_ids=None, *, rng_key=None):
        if force_drop_ids is None:
            drop_ids = (
                jax.random.uniform(rng_key, (labels.shape[0],)) < self.dropout_prob
            )
        else:
            drop_ids = force_drop_ids == 1
        # NOTE: as in the PyTorch module, if dropout_prob == 0 there is no CFG
        # row, so force-dropping would index out of range (inherited behavior).
        labels = jnp.where(drop_ids, self.num_classes, labels)
        return labels

    def __call__(self, labels, train, force_drop_ids=None, *, rng_key=None):
        use_dropout = self.dropout_prob > 0
        if (train and use_dropout) or (force_drop_ids is not None):
            labels = self.token_drop(labels, force_drop_ids, rng_key=rng_key)
        embeddings = pallas_label_embed(labels, self.embedding_table)
        return embeddings


if __name__ == "__main__":
    num_classes = 16
    hidden_size = 128
    dropout_prob = 0.1
    batch = 8

    root = jax.random.PRNGKey(0)
    k_table, k_labels, k_drop = jax.random.split(root, 3)

    embedder = LabelEmbedder(num_classes, hidden_size, dropout_prob, key=k_table)

    labels = jax.random.randint(k_labels, (batch,), 0, num_classes, dtype=jnp.int32)
    # Deterministic CFG drop pattern (force_drop_ids path of the module).
    force_drop_ids = jnp.array([0, 1, 0, 0, 1, 0, 0, 0], dtype=jnp.int32)

    out = embedder(labels, train=True, force_drop_ids=force_drop_ids, rng_key=k_drop)
    out = jax.block_until_ready(out)

    # Sanity check against a pure-JAX reference.
    dropped = jnp.where(force_drop_ids == 1, num_classes, labels)
    ref = embedder.embedding_table[dropped][:, None, :]
    assert out.shape == (batch, 1, hidden_size), out.shape
    assert jnp.allclose(out, ref), "mismatch vs reference gather"

    # Also check the stochastic-drop path runs (values depend on RNG, so only shape).
    out2 = embedder(labels, train=True, rng_key=k_drop)
    out2 = jax.block_until_ready(out2)
    assert out2.shape == (batch, 1, hidden_size)

    print("KERNEL_OK")
</pallas_src>

<mosaic_0001>
module attributes {stable_mosaic.version = 11 : i64} {
  func.func @_embed_gather_kernel(%arg0: i32, %arg1: memref<8xi32, #tpu.memory_space<smem>>, %arg2: memref<17x128xf32, #tpu.memory_space<vmem>>, %arg3: memref<8x128xf32, #tpu.memory_space<vmem>>) attributes {dimension_semantics = [#tpu.dimension_semantics<parallel>], iteration_bounds = array<i64: 1>, scalar_prefetch = 1 : i64, scratch_operands = 0 : i64, tpu.core_type = #tpu.core_type<tc>, window_params = [{pipeline_mode = #tpu.pipeline_mode<synchronous>, transform_indices = @transform_0, window_bounds = array<i64: 17, 128>}, {transform_indices = @transform_1, window_bounds = array<i64: 8, 128>}]} {
    %c8_i32 = arith.constant 8 : i32
    %0 = arith.muli %arg0, %c8_i32 : i32
    %c0_i32 = arith.constant 0 : i32
    %1 = arith.addi %0, %c0_i32 : i32
    %2 = arith.index_cast %1 : i32 to index
    %3 = memref.load %arg1[%2] : memref<8xi32, #tpu.memory_space<smem>>
    %4 = arith.index_cast %3 : i32 to index
    %c0 = arith.constant 0 : index
    %5 = vector.load %arg2[%4, %c0] : memref<17x128xf32, #tpu.memory_space<vmem>>, vector<1x128xf32>
    %6 = vector.shape_cast %5 : vector<1x128xf32> to vector<128xf32>
    %7 = arith.index_cast %c0_i32 : i32 to index
    %c0_0 = arith.constant 0 : index
    %8 = vector.load %arg3[%7, %c0_0] : memref<8x128xf32, #tpu.memory_space<vmem>>, vector<1x128xf32>
    %9 = vector.shape_cast %8 : vector<1x128xf32> to vector<128xf32>
    %10 = vector.shape_cast %6 : vector<128xf32> to vector<1x128xf32>
    tpu.vector_store %arg3[%7, %c0_0], %10 {strides = array<i32>} : memref<8x128xf32, #tpu.memory_space<vmem>>, vector<1x128xf32>,
    %c1_i32 = arith.constant 1 : i32
    %11 = arith.addi %0, %c1_i32 : i32
    %12 = arith.index_cast %11 : i32 to index
    %13 = memref.load %arg1[%12] : memref<8xi32, #tpu.memory_space<smem>>
    %14 = arith.index_cast %13 : i32 to index
    %c0_1 = arith.constant 0 : index
    %15 = vector.load %arg2[%14, %c0_1] : memref<17x128xf32, #tpu.memory_space<vmem>>, vector<1x128xf32>
    %16 = vector.shape_cast %15 : vector<1x128xf32> to vector<128xf32>
    %17 = arith.index_cast %c1_i32 : i32 to index
    %c0_2 = arith.constant 0 : index
    %18 = vector.load %arg3[%17, %c0_2] : memref<8x128xf32, #tpu.memory_space<vmem>>, vector<1x128xf32>
    %19 = vector.shape_cast %18 : vector<1x128xf32> to vector<128xf32>
    %20 = vector.shape_cast %16 : vector<128xf32> to vector<1x128xf32>
    tpu.vector_store %arg3[%17, %c0_2], %20 {strides = array<i32>} : memref<8x128xf32, #tpu.memory_space<vmem>>, vector<1x128xf32>,
    %c2_i32 = arith.constant 2 : i32
    %21 = arith.addi %0, %c2_i32 : i32
    %22 = arith.index_cast %21 : i32 to index
    %23 = memref.load %arg1[%22] : memref<8xi32, #tpu.memory_space<smem>>
    %24 = arith.index_cast %23 : i32 to index
    %c0_3 = arith.constant 0 : index
    %25 = vector.load %arg2[%24, %c0_3] : memref<17x128xf32, #tpu.memory_space<vmem>>, vector<1x128xf32>
    %26 = vector.shape_cast %25 : vector<1x128xf32> to vector<128xf32>
    %27 = arith.index_cast %c2_i32 : i32 to index
    %c0_4 = arith.constant 0 : index
    %28 = vector.load %arg3[%27, %c0_4] : memref<8x128xf32, #tpu.memory_space<vmem>>, vector<1x128xf32>
    %29 = vector.shape_cast %28 : vector<1x128xf32> to vector<128xf32>
    %30 = vector.shape_cast %26 : vector<128xf32> to vector<1x128xf32>
    tpu.vector_store %arg3[%27, %c0_4], %30 {strides = array<i32>} : memref<8x128xf32, #tpu.memory_space<vmem>>, vector<1x128xf32>,
    %c3_i32 = arith.constant 3 : i32
    %31 = arith.addi %0, %c3_i32 : i32
    %32 = arith.index_cast %31 : i32 to index
    %33 = memref.load %arg1[%32] : memref<8xi32, #tpu.memory_space<smem>>
    %34 = arith.index_cast %33 : i32 to index
    %c0_5 = arith.constant 0 : index
    %35 = vector.load %arg2[%34, %c0_5] : memref<17x128xf32, #tpu.memory_space<vmem>>, vector<1x128xf32>
    %36 = vector.shape_cast %35 : vector<1x128xf32> to vector<128xf32>
    %37 = arith.index_cast %c3_i32 : i32 to index
    %c0_6 = arith.constant 0 : index
    %38 = vector.load %arg3[%37, %c0_6] : memref<8x128xf32, #tpu.memory_space<vmem>>, vector<1x128xf32>
    %39 = vector.shape_cast %38 : vector<1x128xf32> to vector<128xf32>
    %40 = vector.shape_cast %36 : vector<128xf32> to vector<1x128xf32>
    tpu.vector_store %arg3[%37, %c0_6], %40 {strides = array<i32>} : memref<8x128xf32, #tpu.memory_space<vmem>>, vector<1x128xf32>,
    %c4_i32 = arith.constant 4 : i32
    %41 = arith.addi %0, %c4_i32 : i32
    %42 = arith.index_cast %41 : i32 to index
    %43 = memref.load %arg1[%42] : memref<8xi32, #tpu.memory_space<smem>>
    %44 = arith.index_cast %43 : i32 to index
    %c0_7 = arith.constant 0 : index
    %45 = vector.load %arg2[%44, %c0_7] : memref<17x128xf32, #tpu.memory_space<vmem>>, vector<1x128xf32>
    %46 = vector.shape_cast %45 : vector<1x128xf32> to vector<128xf32>
    %47 = arith.index_cast %c4_i32 : i32 to index
    %c0_8 = arith.constant 0 : index
    %48 = vector.load %arg3[%47, %c0_8] : memref<8x128xf32, #tpu.memory_space<vmem>>, vector<1x128xf32>
    %49 = vector.shape_cast %48 : vector<1x128xf32> to vector<128xf32>
    %50 = vector.shape_cast %46 : vector<128xf32> to vector<1x128xf32>
    tpu.vector_store %arg3[%47, %c0_8], %50 {strides = array<i32>} : memref<8x128xf32, #tpu.memory_space<vmem>>, vector<1x128xf32>,
    %c5_i32 = arith.constant 5 : i32
    %51 = arith.addi %0, %c5_i32 : i32
    %52 = arith.index_cast %51 : i32 to index
    %53 = memref.load %arg1[%52] : memref<8xi32, #tpu.memory_space<smem>>
    %54 = arith.index_cast %53 : i32 to index
    %c0_9 = arith.constant 0 : index
    %55 = vector.load %arg2[%54, %c0_9] : memref<17x128xf32, #tpu.memory_space<vmem>>, vector<1x128xf32>
    %56 = vector.shape_cast %55 : vector<1x128xf32> to vector<128xf32>
    %57 = arith.index_cast %c5_i32 : i32 to index
    %c0_10 = arith.constant 0 : index
    %58 = vector.load %arg3[%57, %c0_10] : memref<8x128xf32, #tpu.memory_space<vmem>>, vector<1x128xf32>
    %59 = vector.shape_cast %58 : vector<1x128xf32> to vector<128xf32>
    %60 = vector.shape_cast %56 : vector<128xf32> to vector<1x128xf32>
    tpu.vector_store %arg3[%57, %c0_10], %60 {strides = array<i32>} : memref<8x128xf32, #tpu.memory_space<vmem>>, vector<1x128xf32>,
    %c6_i32 = arith.constant 6 : i32
    %61 = arith.addi %0, %c6_i32 : i32
    %62 = arith.index_cast %61 : i32 to index
    %63 = memref.load %arg1[%62] : memref<8xi32, #tpu.memory_space<smem>>
    %64 = arith.index_cast %63 : i32 to index
    %c0_11 = arith.constant 0 : index
    %65 = vector.load %arg2[%64, %c0_11] : memref<17x128xf32, #tpu.memory_space<vmem>>, vector<1x128xf32>
    %66 = vector.shape_cast %65 : vector<1x128xf32> to vector<128xf32>
    %67 = arith.index_cast %c6_i32 : i32 to index
    %c0_12 = arith.constant 0 : index
    %68 = vector.load %arg3[%67, %c0_12] : memref<8x128xf32, #tpu.memory_space<vmem>>, vector<1x128xf32>
    %69 = vector.shape_cast %68 : vector<1x128xf32> to vector<128xf32>
    %70 = vector.shape_cast %66 : vector<128xf32> to vector<1x128xf32>
    tpu.vector_store %arg3[%67, %c0_12], %70 {strides = array<i32>} : memref<8x128xf32, #tpu.memory_space<vmem>>, vector<1x128xf32>,
    %c7_i32 = arith.constant 7 : i32
    %71 = arith.addi %0, %c7_i32 : i32
    %72 = arith.index_cast %71 : i32 to index
    %73 = memref.load %arg1[%72] : memref<8xi32, #tpu.memory_space<smem>>
    %74 = arith.index_cast %73 : i32 to index
    %c0_13 = arith.constant 0 : index
    %75 = vector.load %arg2[%74, %c0_13] : memref<17x128xf32, #tpu.memory_space<vmem>>, vector<1x128xf32>
    %76 = vector.shape_cast %75 : vector<1x128xf32> to vector<128xf32>
    %77 = arith.index_cast %c7_i32 : i32 to index
    %c0_14 = arith.constant 0 : index
    %78 = vector.load %arg3[%77, %c0_14] : memref<8x128xf32, #tpu.memory_space<vmem>>, vector<1x128xf32>
    %79 = vector.shape_cast %78 : vector<1x128xf32> to vector<128xf32>
    %80 = vector.shape_cast %76 : vector<128xf32> to vector<1x128xf32>
    tpu.vector_store %arg3[%77, %c0_14], %80 {strides = array<i32>} : memref<8x128xf32, #tpu.memory_space<vmem>>, vector<1x128xf32>,
    %c8_i32_15 = arith.constant 8 : i32
    return
  }
  func.func @transform_0(%arg0: i32, %arg1: memref<8xi32, #tpu.memory_space<smem>>) -> (i32, i32) {
    %c0_i32 = arith.constant 0 : i32
    %c0_i32_0 = arith.constant 0 : i32
    %c0_i32_1 = arith.constant 0 : i32
    return %c0_i32, %c0_i32_0 : i32, i32
  }
  func.func @transform_1(%arg0: i32, %arg1: memref<8xi32, #tpu.memory_space<smem>>) -> (i32, i32) {
    %c0_i32 = arith.constant 0 : i32
    %c0_i32_0 = arith.constant 0 : i32
    return %arg0, %c0_i32 : i32, i32
  }
}

</mosaic_0001>

<bundles_post_ra>
// kernel: tpu_custom_call.1
= control target key start
LH: loop header
LB: loop body
LE: loop exit
PB: predicated region body
PF: predicated region fallthrough
CT: control target
= control target key end

     0   :  { %s177_s12 = smov [#allocation3]   ;;  %s206_s0 = inlined_call_operand.hbm [shape: s32[8], index: 0, kind: input, shape index: {}]   ;;  %s207_s1 = inlined_call_operand.hbm [shape: f32[17,128], index: 1, kind: input, shape index: {}]   ;;  %s208_s2 = inlined_call_operand.hbm [shape: f32[8,128], index: 2, kind: output, shape index: {}]  }
   0x1   :  { %s8_s11 = sshll.u32 %s206_s0, 4  ;;  %s9_s11 = int_to_ptr.hbm [resolvable:$true] %s8_s11 }
   0x2   :  { %11 = dma.hbm_to_smem %s9_s11, 16, %s177_s12, [#allocation2] }
   0x3   :  { %171 = dma.done.wait [#allocation2], 16 }
   0x4   :  { %172 = vsyncadd [#allocation2], 4294967280 }
   0x5   :  { %14 = sfence }
   0x6   :  { %15 = vsyncpa [#allocation5], 0 }
   0x7   :  { %16 = vsyncpa [#allocation6], 0  ;;  %s21_s15 = sshll.u32 %s207_s1, 4  ;;  %s178_s16 = smov [#allocation4]   ;;  %s22_s15 = int_to_ptr.hbm [resolvable:$true] %s21_s15 }
   0x8   :  { %s23_s17 = sshll.u32 %s178_s16, 4  ;;  %s179_s18 = smov 128   ;;  %s24_s17 = int_to_ptr.vmem [resolvable:$true] %s23_s17 }
   0x9   :  { %s180_s19 = smov 8  }
   0xa   :  { %29 = dma.hbm_to_vmem [thread:$0]  %s22_s15, 384, %s24_s17, [#allocation5], %s179_s18, %s179_s18, %s180_s19  }
   0xb   :  { %173 = dma.done.wait [#allocation5], 384  }
   0xc   :  { %174 = vsyncadd [#allocation5], 4294966912  ;;  %s35_s0 = sld [smem:[#allocation3]]  ;;  %s181_s29 = smov [#allocation7]  }
   0xd   :  { %s99_s20 = sld [smem:[#allocation3 + $0x1]]  ;;  %s79_s30 = sshll.u32 %s181_s29, 4  ;;  %s80_s30 = int_to_ptr.vmem [resolvable:$true] %s79_s30 }
   0xe   :  { %s100_s21 = sld [smem:[#allocation3 + $0x2]]  ;;  %s81_s6 = sshll.u32 %s208_s2, 4  ;;  %s82_s6 = int_to_ptr.hbm [resolvable:$true] %s81_s6 }
   0xf   :  { %s101_s22 = sld [smem:[#allocation3 + $0x3]] }
  0x10   :  { %s102_s23 = sld [smem:[#allocation3 + $0x4]] }
  0x11   :  { %s103_s24 = sld [smem:[#allocation3 + $0x5]] }
  0x12   :  { %s104_s25 = sld [smem:[#allocation3 + $0x6]]  ;;  %s36_s26 = scalar_lea.vmem [#allocation4], %s35_s0 }
  0x13   :  { %v37_v0 = vld [vmem:[%s36_s26] sm:$0x1]  ;;  %s105_s27 = sld [smem:[#allocation3 + $0x7]]  ;;  %s41_s1 = scalar_lea.vmem [#allocation4], %s99_s20 }
  0x14   :  { %38 = vst [vmem:[#allocation7] sm:$0x1] %v37_v0  ;;  %v42_v1 = vld [vmem:[%s41_s1] sm:$0x1]  ;;  %s46_s28 = scalar_lea.vmem [#allocation4], %s100_s21 }
  0x15   :  { %43 = vst [vmem:[#allocation7 + $0x1] sm:$0x1] %v42_v1  ;;  %v47_v2 = vld [vmem:[%s46_s28] sm:$0x1]  ;;  %s51_s3 = scalar_lea.vmem [#allocation4], %s101_s22 }
  0x16   :  { %48 = vst [vmem:[#allocation7 + $0x2] sm:$0x1] %v47_v2  ;;  %v52_v3 = vld [vmem:[%s51_s3] sm:$0x1]  ;;  %s56_s7 = scalar_lea.vmem [#allocation4], %s102_s23 }
  0x17   :  { %53 = vst [vmem:[#allocation7 + $0x3] sm:$0x1] %v52_v3  ;;  %v57_v4 = vld [vmem:[%s56_s7] sm:$0x1]  ;;  %s61_s8 = scalar_lea.vmem [#allocation4], %s103_s24 }
  0x18   :  { %58 = vst [vmem:[#allocation7 + $0x4] sm:$0x1] %v57_v4  ;;  %v62_v5 = vld [vmem:[%s61_s8] sm:$0x1]  ;;  %s66_s9 = scalar_lea.vmem [#allocation4], %s104_s25 }
  0x19   :  { %63 = vst [vmem:[#allocation7 + $0x5] sm:$0x1] %v62_v5  ;;  %v67_v6 = vld [vmem:[%s66_s9] sm:$0x1]  ;;  %s71_s10 = scalar_lea.vmem [#allocation4], %s105_s27 }
  0x1a   :  { %68 = vst [vmem:[#allocation7 + $0x6] sm:$0x1] %v67_v6  ;;  %v72_v7 = vld [vmem:[%s71_s10] sm:$0x1] }
  0x1b   :  { %73 = vst [vmem:[#allocation7 + $0x7] sm:$0x1] %v72_v7 }
  0x1c   :  { %84 = dma.vmem_to_hbm [thread:$0]  %s80_s30, 128, %s82_s6, [#allocation6]  }
  0x1d   :  { %175 = dma.done.wait [#allocation6], 128  }
  0x1e   :  { %176 = vsyncadd [#allocation6], 4294967168 }
  0x1f   :  { %89 = vsyncpa [#allocation5], 1 }
  0x20   :  { %90 = vsyncpa [#allocation6], 1 }

</bundles_post_ra>
